<compile_context>
chip_gen: v5e
topology: v5e:2x2
jax: 0.10.0
libtpu: 0.0.40
codegen_flags: <defaults>
</compile_context>

<pallas_src>
import functools
import random

import jax
import jax.numpy as jnp
from jax import lax
from jax.experimental import pallas as pl
from jax.experimental.pallas import tpu as pltpu


def _decaug_loss_kernel(
    labels_ref,        # (B, 2)        i32  [:,0]=gt_label, [:,1]=gt_concept
    logits_cat_ref,    # (B, Ccat)     f32
    logits_con_ref,    # (B, Ccon)     f32
    feat_ref,          # (B, H)        f32  feature_category
    w_tensor_ref,      # (Ccon, H)     f32  fcc0.weight
    w_tensor_l_ref,    # (Ccat, H)     f32  fc0.weight
    w_branch_stk_ref,  # (2H, Fin)     f32  [concept_branch.weight ; category_branch.weight]
    w_out_pack_ref,    # (2H+1, Ccat)  f32  [classification.weight.T ; classification.bias]
    ratio_ref,         # (1, 1)        f32  SMEM scalar (random.random() in torch)
    loss_ref,          # (1, 1)        f32  SMEM scalar output
    *,
    balance1,
    balance2,
    balanceorth,
    epsilon,
    perturbation,
    H,
):
    f32 = jnp.float32
    dot = functools.partial(jnp.dot, preferred_element_type=f32)

    logits_cat = logits_cat_ref[...].astype(f32)
    logits_con = logits_con_ref[...].astype(f32)
    feat = feat_ref[...].astype(f32)

    B, Ccat = logits_cat.shape
    Ccon = logits_con.shape[1]

    # One-hot labels (replaces torch integer row-indexing and the CE target gather).
    labels = labels_ref[...]                      # (B, 2) int32
    lab = labels[:, 0:1]
    con = labels[:, 1:2]
    onehot_lab = (lab == lax.broadcasted_iota(jnp.int32, (B, Ccat), 1)).astype(f32)
    onehot_con = (con == lax.broadcasted_iota(jnp.int32, (B, Ccon), 1)).astype(f32)

    def cross_entropy(logits, onehot):
        m = jnp.max(logits, axis=1, keepdims=True)
        lse = m + jnp.log(jnp.sum(jnp.exp(logits - m), axis=1, keepdims=True))
        picked = jnp.sum(onehot * logits, axis=1, keepdims=True)
        return jnp.mean(lse - picked)

    loss1 = cross_entropy(logits_cat, onehot_lab)
    loss2 = cross_entropy(logits_con, onehot_con)

    w_tensor = w_tensor_ref[...].astype(f32)         # (Ccon, H)
    w_tensor_l = w_tensor_l_ref[...].astype(f32)     # (Ccat, H)
    w_branch = w_branch_stk_ref[:H, :].astype(f32)   # (H, Fin) concept_branch.weight
    w_branch_l = w_branch_stk_ref[H:, :].astype(f32) # (H, Fin) category_branch.weight

    # Fused "-onehot@W + logits@W" -> (logits - onehot) @ W   (one VPU sub + one MXU pass).
    d_con = logits_con - onehot_con                  # (B, Ccon)
    d_cat = logits_cat - onehot_lab                  # (B, Ccat)

    # Concept side, re-associated: grad_aug is the intermediate of the full chain.
    grad_aug = dot(d_con, w_tensor)                  # (B, H)
    grad = dot(grad_aug, w_branch)                   # (B, Fin)

    # Category side, re-associated (no explicit w_l = fc0.W @ category_branch.W).
    grad_l = dot(dot(d_cat, w_tensor_l), w_branch_l) # (B, Fin)

    # L2 normalize with sqrt + approx reciprocal (EUP) instead of f32 divides.
    gnorm = jnp.sqrt(jnp.sum(grad * grad, axis=1, keepdims=True))
    grad_norm = grad * pl.reciprocal(gnorm + epsilon, approx=True)
    gnorm_l = jnp.sqrt(jnp.sum(grad_l * grad_l, axis=1, keepdims=True))
    grad_norm_l = grad_l * pl.reciprocal(gnorm_l + epsilon, approx=True)

    # loss_orth = sum_b (<grad_norm_b, grad_norm_l_b>)^2   (== bmm + square + sum in torch)
    dots_b = jnp.sum(grad_norm * grad_norm_l, axis=1, keepdims=True)   # (B, 1)
    loss_orth = jnp.sum(dots_b * dots_b)

    # FGSM-style feature augmentation on the concept head (reuses grad_aug).
    ga_norm = jnp.sqrt(jnp.sum(grad_aug * grad_aug, axis=1, keepdims=True))
    ratio = ratio_ref[0, 0]
    feature_aug = (ratio * perturbation) * pl.reciprocal(ga_norm + epsilon, approx=True) * grad_aug

    # embs = concat([feat, feat + feature_aug], 1); output = embs @ W_out.T + b_out
    # Split the matmul instead of concatenating; W_out arrives pre-transposed + bias packed,
    # so slices below are sublane-aligned views (no in-kernel transpose / lane slicing).
    w_out_pack = w_out_pack_ref[...].astype(f32)     # (2H+1, Ccat)
    w_out_a_t = w_out_pack[:H, :]                    # (H, Ccat) weights for feat
    w_out_b_t = w_out_pack[H:2 * H, :]               # (H, Ccat) weights for feat + aug
    b_out = w_out_pack[2 * H:, :]                    # (1, Ccat)
    output = dot(feat, w_out_a_t) + dot(feat + feature_aug, w_out_b_t) + b_out

    loss_class = cross_entropy(output, onehot_lab)

    loss_ref[0, 0] = (loss_class
                      + balance1 * loss1
                      + balance2 * loss2
                      + balanceorth * loss_orth)


def decaug_loss(
    logits_category,
    logits_concept,
    feature_category,
    gt_label,
    gt_concept,
    w_branch,       # concept_branch.weight   (H, Fin)
    w_tensor,       # fcc0.weight             (Ccon, H)
    w_branch_l,     # category_branch.weight  (H, Fin)
    w_tensor_l,     # fc0.weight              (Ccat, H)
    w_out,          # classification.weight   (Ccat, 2H)
    b_out,          # classification.bias     (Ccat,)
    ratio,          # scalar in [0, 1)        (torch: random.random())
    *,
    balance1=0.01,
    balance2=0.01,
    balanceorth=0.01,
    epsilon=1e-8,
    perturbation=1.0,
):
    """Single gridless pallas_call: whole-array VMEM blocks, scalar SMEM in/out."""
    B, H = feature_category.shape

    # Host-side packing (free relative to the kernel; cuts DMA'd operands 12 -> 9).
    labels = jnp.stack(
        [jnp.reshape(gt_label, (B,)).astype(jnp.int32),
         jnp.reshape(gt_concept, (B,)).astype(jnp.int32)],
        axis=1)                                                       # (B, 2)
    w_branch_stack = jnp.concatenate([w_branch, w_branch_l], axis=0)  # (2H, Fin)
    w_out_pack = jnp.concatenate(
        [jnp.transpose(w_out), jnp.reshape(b_out, (1, -1))], axis=0)  # (2H+1, Ccat)

    kernel = functools.partial(
        _decaug_loss_kernel,
        balance1=float(balance1),
        balance2=float(balance2),
        balanceorth=float(balanceorth),
        epsilon=float(epsilon),
        perturbation=float(perturbation),
        H=int(H),
    )

    vmem = pl.BlockSpec(memory_space=pltpu.MemorySpace.VMEM)
    smem = pl.BlockSpec(memory_space=pltpu.MemorySpace.SMEM)

    loss = pl.pallas_call(
        kernel,
        out_shape=jax.ShapeDtypeStruct((1, 1), jnp.float32),
        in_specs=[vmem] * 8 + [smem],
        out_specs=smem,
    )(
        labels,
        logits_category,
        logits_concept,
        feature_category,
        w_tensor,
        w_tensor_l,
        w_branch_stack,
        w_out_pack,
        jnp.reshape(jnp.asarray(ratio, dtype=jnp.float32), (1, 1)),
    )
    return loss[0, 0]


if __name__ == "__main__":
    # Small synthetic shapes consistent with the DecAug forward:
    #   B batch, Fin backbone feature dim, H branch hidden dim,
    #   Ccat category classes, Ccon concept classes.
    B, Fin, H, Ccat, Ccon = 8, 32, 32, 4, 3

    key = jax.random.PRNGKey(0)
    ks = jax.random.split(key, 12)

    logits_category = jax.random.normal(ks[0], (B, Ccat), jnp.float32)
    logits_concept = jax.random.normal(ks[1], (B, Ccon), jnp.float32)
    feature_category = jax.random.normal(ks[2], (B, H), jnp.float32)
    gt_label = jax.random.randint(ks[3], (B,), 0, Ccat, dtype=jnp.int32)
    gt_concept = jax.random.randint(ks[4], (B,), 0, Ccon, dtype=jnp.int32)

    # Deterministic synthetic "model.named_parameters()" (PyTorch Linear layout: (out, in)).
    w_branch = 0.1 * jax.random.normal(ks[5], (H, Fin), jnp.float32)      # concept_branch.weight
    w_tensor = 0.1 * jax.random.normal(ks[6], (Ccon, H), jnp.float32)     # fcc0.weight
    w_branch_l = 0.1 * jax.random.normal(ks[7], (H, Fin), jnp.float32)    # category_branch.weight
    w_tensor_l = 0.1 * jax.random.normal(ks[8], (Ccat, H), jnp.float32)   # fc0.weight
    w_out = 0.1 * jax.random.normal(ks[9], (Ccat, 2 * H), jnp.float32)    # classification.weight
    b_out = 0.01 * jax.random.normal(ks[10], (Ccat,), jnp.float32)        # classification.bias

    # torch forward draws ratio = random.random(); make it deterministic here.
    # TODO(synk): the torch module uses Python's global RNG at forward time; mirrored host-side.
    random.seed(0)
    ratio = random.random()

    loss = decaug_loss(
        logits_category, logits_concept, feature_category,
        gt_label, gt_concept,
        w_branch, w_tensor, w_branch_l, w_tensor_l, w_out, b_out,
        ratio,
    )
    jax.block_until_ready(loss)
    print("KERNEL_OK")
</pallas_src>

<mosaic_0001>
module attributes {stable_mosaic.version = 11 : i64} {
  func.func @_decaug_loss_kernel(%arg0: memref<8x2xi32, #tpu.memory_space<vmem>>, %arg1: memref<8x4xf32, #tpu.memory_space<vmem>>, %arg2: memref<8x3xf32, #tpu.memory_space<vmem>>, %arg3: memref<8x32xf32, #tpu.memory_space<vmem>>, %arg4: memref<3x32xf32, #tpu.memory_space<vmem>>, %arg5: memref<4x32xf32, #tpu.memory_space<vmem>>, %arg6: memref<64x32xf32, #tpu.memory_space<vmem>>, %arg7: memref<65x4xf32, #tpu.memory_space<vmem>>, %arg8: memref<1x1xf32, #tpu.memory_space<smem>>, %arg9: memref<1x1xf32, #tpu.memory_space<smem>>) attributes {dimension_semantics = [], scalar_prefetch = 0 : i64, scratch_operands = 0 : i64, tpu.core_type = #tpu.core_type<tc>} {
    %c0 = arith.constant 0 : index
    %c0_0 = arith.constant 0 : index
    %0 = vector.load %arg1[%c0, %c0_0] : memref<8x4xf32, #tpu.memory_space<vmem>>, vector<8x4xf32>
    %c0_1 = arith.constant 0 : index
    %c0_2 = arith.constant 0 : index
    %1 = vector.load %arg2[%c0_1, %c0_2] : memref<8x3xf32, #tpu.memory_space<vmem>>, vector<8x3xf32>
    %c0_3 = arith.constant 0 : index
    %c0_4 = arith.constant 0 : index
    %2 = vector.load %arg3[%c0_3, %c0_4] : memref<8x32xf32, #tpu.memory_space<vmem>>, vector<8x32xf32>
    %c0_5 = arith.constant 0 : index
    %c0_6 = arith.constant 0 : index
    %3 = vector.load %arg0[%c0_5, %c0_6] : memref<8x2xi32, #tpu.memory_space<vmem>>, vector<8x2xi32>
    %4 = vector.extract_strided_slice %3 {offsets = [0, 0], sizes = [8, 1], strides = [1, 1]} : vector<8x2xi32> to vector<8x1xi32>
    %5 = vector.extract_strided_slice %3 {offsets = [0, 1], sizes = [8, 1], strides = [1, 1]} : vector<8x2xi32> to vector<8x1xi32>
    %6 = tpu.iota {dimensions = array<i32: 1>} : vector<8x4xi32>
    %7 = vector.broadcast %4 : vector<8x1xi32> to vector<8x4xi32>
    %8 = arith.cmpi eq, %7, %6 : vector<8x4xi32>
    %9 = arith.extui %8 : vector<8x4xi1> to vector<8x4xi32>
    %10 = arith.sitofp %9 : vector<8x4xi32> to vector<8x4xf32>
    %11 = tpu.iota {dimensions = array<i32: 1>} : vector<8x3xi32>
    %12 = vector.broadcast %5 : vector<8x1xi32> to vector<8x3xi32>
    %13 = arith.cmpi eq, %12, %11 : vector<8x3xi32>
    %14 = arith.extui %13 : vector<8x3xi1> to vector<8x3xi32>
    %15 = arith.sitofp %14 : vector<8x3xi32> to vector<8x3xf32>
    %cst = arith.constant dense<0xFF800000> : vector<8xf32>
    %16 = vector.multi_reduction <maximumf>, %0, %cst [1] : vector<8x4xf32> to vector<8xf32>
    %17 = vector.shape_cast %16 : vector<8xf32> to vector<8x1xf32>
    %18 = vector.broadcast %17 : vector<8x1xf32> to vector<8x4xf32>
    %19 = arith.subf %0, %18 : vector<8x4xf32>
    %20 = math.exp %19 : vector<8x4xf32>
    %cst_7 = arith.constant dense<0.000000e+00> : vector<8xf32>
    %21 = vector.multi_reduction <add>, %20, %cst_7 [1] : vector<8x4xf32> to vector<8xf32>
    %22 = vector.shape_cast %21 : vector<8xf32> to vector<8x1xf32>
    %23 = math.log %22 : vector<8x1xf32>
    %24 = arith.addf %17, %23 : vector<8x1xf32>
    %25 = arith.mulf %10, %0 : vector<8x4xf32>
    %cst_8 = arith.constant dense<0.000000e+00> : vector<8xf32>
    %26 = vector.multi_reduction <add>, %25, %cst_8 [1] : vector<8x4xf32> to vector<8xf32>
    %27 = vector.shape_cast %26 : vector<8xf32> to vector<8x1xf32>
    %28 = arith.subf %24, %27 : vector<8x1xf32>
    %29 = vector.shape_cast %28 : vector<8x1xf32> to vector<1x8x1xf32>
    %cst_9 = arith.constant dense<0.000000e+00> : vector<1xf32>
    %30 = vector.multi_reduction <add>, %29, %cst_9 [1, 2] : vector<1x8x1xf32> to vector<1xf32>
    %31 = vector.shape_cast %30 : vector<1xf32> to vector<1x1x1xf32>
    %32 = vector.extract %31[0, 0, 0] : f32 from vector<1x1x1xf32>
    %cst_10 = arith.constant 8.000000e+00 : f32
    %33 = arith.divf %32, %cst_10 : f32
    %cst_11 = arith.constant dense<0xFF800000> : vector<8xf32>
    %34 = vector.multi_reduction <maximumf>, %1, %cst_11 [1] : vector<8x3xf32> to vector<8xf32>
    %35 = vector.shape_cast %34 : vector<8xf32> to vector<8x1xf32>
    %36 = vector.broadcast %35 : vector<8x1xf32> to vector<8x3xf32>
    %37 = arith.subf %1, %36 : vector<8x3xf32>
    %38 = math.exp %37 : vector<8x3xf32>
    %cst_12 = arith.constant dense<0.000000e+00> : vector<8xf32>
    %39 = vector.multi_reduction <add>, %38, %cst_12 [1] : vector<8x3xf32> to vector<8xf32>
    %40 = vector.shape_cast %39 : vector<8xf32> to vector<8x1xf32>
    %41 = math.log %40 : vector<8x1xf32>
    %42 = arith.addf %35, %41 : vector<8x1xf32>
    %43 = arith.mulf %15, %1 : vector<8x3xf32>
    %cst_13 = arith.constant dense<0.000000e+00> : vector<8xf32>
    %44 = vector.multi_reduction <add>, %43, %cst_13 [1] : vector<8x3xf32> to vector<8xf32>
    %45 = vector.shape_cast %44 : vector<8xf32> to vector<8x1xf32>
    %46 = arith.subf %42, %45 : vector<8x1xf32>
    %47 = vector.shape_cast %46 : vector<8x1xf32> to vector<1x8x1xf32>
    %cst_14 = arith.constant dense<0.000000e+00> : vector<1xf32>
    %48 = vector.multi_reduction <add>, %47, %cst_14 [1, 2] : vector<1x8x1xf32> to vector<1xf32>
    %49 = vector.shape_cast %48 : vector<1xf32> to vector<1x1x1xf32>
    %50 = vector.extract %49[0, 0, 0] : f32 from vector<1x1x1xf32>
    %cst_15 = arith.constant 8.000000e+00 : f32
    %51 = arith.divf %50, %cst_15 : f32
    %c0_16 = arith.constant 0 : index
    %c0_17 = arith.constant 0 : index
    %52 = vector.load %arg4[%c0_16, %c0_17] : memref<3x32xf32, #tpu.memory_space<vmem>>, vector<3x32xf32>
    %c0_18 = arith.constant 0 : index
    %c0_19 = arith.constant 0 : index
    %53 = vector.load %arg5[%c0_18, %c0_19] : memref<4x32xf32, #tpu.memory_space<vmem>>, vector<4x32xf32>
    %c0_20 = arith.constant 0 : index
    %c0_21 = arith.constant 0 : index
    %54 = vector.load %arg6[%c0_20, %c0_21] : memref<64x32xf32, #tpu.memory_space<vmem>>, vector<32x32xf32>
    %c32 = arith.constant 32 : index
    %c0_22 = arith.constant 0 : index
    %55 = vector.load %arg6[%c32, %c0_22] : memref<64x32xf32, #tpu.memory_space<vmem>>, vector<32x32xf32>
    %56 = arith.subf %1, %15 : vector<8x3xf32>
    %57 = arith.subf %0, %10 : vector<8x4xf32>
    %cst_23 = arith.constant dense<0.000000e+00> : vector<8x32xf32>
    %58 = tpu.matmul %56, %52, %cst_23 {dimension_numbers = #tpu.dot_dimension_numbers<[1], [0], [0], [1], [0, 0, 1, 1], [], []>} : vector<8x3xf32>, vector<3x32xf32>, vector<8x32xf32> -> vector<8x32xf32>
    %cst_24 = arith.constant dense<0.000000e+00> : vector<8x32xf32>
    %59 = tpu.matmul %58, %54, %cst_24 {dimension_numbers = #tpu.dot_dimension_numbers<[1], [0], [0], [1], [0, 0, 1, 1], [], []>} : vector<8x32xf32>, vector<32x32xf32>, vector<8x32xf32> -> vector<8x32xf32>
    %cst_25 = arith.constant dense<0.000000e+00> : vector<8x32xf32>
    %60 = tpu.matmul %57, %53, %cst_25 {dimension_numbers = #tpu.dot_dimension_numbers<[1], [0], [0], [1], [0, 0, 1, 1], [], []>} : vector<8x4xf32>, vector<4x32xf32>, vector<8x32xf32> -> vector<8x32xf32>
    %cst_26 = arith.constant dense<0.000000e+00> : vector<8x32xf32>
    %61 = tpu.matmul %60, %55, %cst_26 {dimension_numbers = #tpu.dot_dimension_numbers<[1], [0], [0], [1], [0, 0, 1, 1], [], []>} : vector<8x32xf32>, vector<32x32xf32>, vector<8x32xf32> -> vector<8x32xf32>
    %62 = arith.mulf %59, %59 : vector<8x32xf32>
    %cst_27 = arith.constant dense<0.000000e+00> : vector<8xf32>
    %63 = vector.multi_reduction <add>, %62, %cst_27 [1] : vector<8x32xf32> to vector<8xf32>
    %64 = vector.shape_cast %63 : vector<8xf32> to vector<8x1xf32>
    %65 = math.sqrt %64 : vector<8x1xf32>
    %cst_28 = arith.constant 9.99999993E-9 : f32
    %66 = vector.broadcast %cst_28 : f32 to vector<8x1xf32>
    %67 = arith.addf %65, %66 : vector<8x1xf32>
    %68 = tpu.reciprocal %67 {approx = true} : vector<8x1xf32> -> vector<8x1xf32>
    %69 = vector.broadcast %68 : vector<8x1xf32> to vector<8x32xf32>
    %70 = arith.mulf %59, %69 : vector<8x32xf32>
    %71 = arith.mulf %61, %61 : vector<8x32xf32>
    %cst_29 = arith.constant dense<0.000000e+00> : vector<8xf32>
    %72 = vector.multi_reduction <add>, %71, %cst_29 [1] : vector<8x32xf32> to vector<8xf32>
    %73 = vector.shape_cast %72 : vector<8xf32> to vector<8x1xf32>
    %74 = math.sqrt %73 : vector<8x1xf32>
    %cst_30 = arith.constant 9.99999993E-9 : f32
    %75 = vector.broadcast %cst_30 : f32 to vector<8x1xf32>
    %76 = arith.addf %74, %75 : vector<8x1xf32>
    %77 = tpu.reciprocal %76 {approx = true} : vector<8x1xf32> -> vector<8x1xf32>
    %78 = vector.broadcast %77 : vector<8x1xf32> to vector<8x32xf32>
    %79 = arith.mulf %61, %78 : vector<8x32xf32>
    %80 = arith.mulf %70, %79 : vector<8x32xf32>
    %cst_31 = arith.constant dense<0.000000e+00> : vector<8xf32>
    %81 = vector.multi_reduction <add>, %80, %cst_31 [1] : vector<8x32xf32> to vector<8xf32>
    %82 = vector.shape_cast %81 : vector<8xf32> to vector<8x1xf32>
    %83 = arith.mulf %82, %82 : vector<8x1xf32>
    %84 = vector.shape_cast %83 : vector<8x1xf32> to vector<1x8x1xf32>
    %cst_32 = arith.constant dense<0.000000e+00> : vector<1xf32>
    %85 = vector.multi_reduction <add>, %84, %cst_32 [1, 2] : vector<1x8x1xf32> to vector<1xf32>
    %86 = vector.shape_cast %85 : vector<1xf32> to vector<1x1x1xf32>
    %87 = vector.extract %86[0, 0, 0] : f32 from vector<1x1x1xf32>
    %88 = arith.mulf %58, %58 : vector<8x32xf32>
    %cst_33 = arith.constant dense<0.000000e+00> : vector<8xf32>
    %89 = vector.multi_reduction <add>, %88, %cst_33 [1] : vector<8x32xf32> to vector<8xf32>
    %90 = vector.shape_cast %89 : vector<8xf32> to vector<8x1xf32>
    %91 = math.sqrt %90 : vector<8x1xf32>
    %c0_34 = arith.constant 0 : index
    %c0_35 = arith.constant 0 : index
    %92 = memref.load %arg8[%c0_34, %c0_35] : memref<1x1xf32, #tpu.memory_space<smem>>
    %cst_36 = arith.constant 1.000000e+00 : f32
    %93 = arith.mulf %92, %cst_36 : f32
    %cst_37 = arith.constant 9.99999993E-9 : f32
    %94 = vector.broadcast %cst_37 : f32 to vector<8x1xf32>
    %95 = arith.addf %91, %94 : vector<8x1xf32>
    %96 = tpu.reciprocal %95 {approx = true} : vector<8x1xf32> -> vector<8x1xf32>
    %97 = vector.broadcast %93 : f32 to vector<8x1xf32>
    %98 = arith.mulf %97, %96 : vector<8x1xf32>
    %99 = vector.broadcast %98 : vector<8x1xf32> to vector<8x32xf32>
    %100 = arith.mulf %99, %58 : vector<8x32xf32>
    %c0_38 = arith.constant 0 : index
    %c0_39 = arith.constant 0 : index
    %101 = vector.load %arg7[%c0_38, %c0_39] : memref<65x4xf32, #tpu.memory_space<vmem>>, vector<65x4xf32>
    %102 = vector.extract_strided_slice %101 {offsets = [0, 0], sizes = [32, 4], strides = [1, 1]} : vector<65x4xf32> to vector<32x4xf32>
    %103 = vector.extract_strided_slice %101 {offsets = [32, 0], sizes = [32, 4], strides = [1, 1]} : vector<65x4xf32> to vector<32x4xf32>
    %104 = vector.extract_strided_slice %101 {offsets = [64, 0], sizes = [1, 4], strides = [1, 1]} : vector<65x4xf32> to vector<1x4xf32>
    %cst_40 = arith.constant dense<0.000000e+00> : vector<8x4xf32>
    %105 = tpu.matmul %2, %102, %cst_40 {dimension_numbers = #tpu.dot_dimension_numbers<[1], [0], [0], [1], [0, 0, 1, 1], [], []>} : vector<8x32xf32>, vector<32x4xf32>, vector<8x4xf32> -> vector<8x4xf32>
    %106 = arith.addf %2, %100 : vector<8x32xf32>
    %cst_41 = arith.constant dense<0.000000e+00> : vector<8x4xf32>
    %107 = tpu.matmul %106, %103, %cst_41 {dimension_numbers = #tpu.dot_dimension_numbers<[1], [0], [0], [1], [0, 0, 1, 1], [], []>} : vector<8x32xf32>, vector<32x4xf32>, vector<8x4xf32> -> vector<8x4xf32>
    %108 = arith.addf %105, %107 : vector<8x4xf32>
    %109 = vector.broadcast %104 : vector<1x4xf32> to vector<8x4xf32>
    %110 = arith.addf %108, %109 : vector<8x4xf32>
    %cst_42 = arith.constant dense<0xFF800000> : vector<8xf32>
    %111 = vector.multi_reduction <maximumf>, %110, %cst_42 [1] : vector<8x4xf32> to vector<8xf32>
    %112 = vector.shape_cast %111 : vector<8xf32> to vector<8x1xf32>
    %113 = vector.broadcast %112 : vector<8x1xf32> to vector<8x4xf32>
    %114 = arith.subf %110, %113 : vector<8x4xf32>
    %115 = math.exp %114 : vector<8x4xf32>
    %cst_43 = arith.constant dense<0.000000e+00> : vector<8xf32>
    %116 = vector.multi_reduction <add>, %115, %cst_43 [1] : vector<8x4xf32> to vector<8xf32>
    %117 = vector.shape_cast %116 : vector<8xf32> to vector<8x1xf32>
    %118 = math.log %117 : vector<8x1xf32>
    %119 = arith.addf %112, %118 : vector<8x1xf32>
    %120 = arith.mulf %10, %110 : vector<8x4xf32>
    %cst_44 = arith.constant dense<0.000000e+00> : vector<8xf32>
    %121 = vector.multi_reduction <add>, %120, %cst_44 [1] : vector<8x4xf32> to vector<8xf32>
    %122 = vector.shape_cast %121 : vector<8xf32> to vector<8x1xf32>
    %123 = arith.subf %119, %122 : vector<8x1xf32>
    %124 = vector.shape_cast %123 : vector<8x1xf32> to vector<1x8x1xf32>
    %cst_45 = arith.constant dense<0.000000e+00> : vector<1xf32>
    %125 = vector.multi_reduction <add>, %124, %cst_45 [1, 2] : vector<1x8x1xf32> to vector<1xf32>
    %126 = vector.shape_cast %125 : vector<1xf32> to vector<1x1x1xf32>
    %127 = vector.extract %126[0, 0, 0] : f32 from vector<1x1x1xf32>
    %cst_46 = arith.constant 8.000000e+00 : f32
    %128 = arith.divf %127, %cst_46 : f32
    %cst_47 = arith.constant 0.00999999977 : f32
    %129 = arith.mulf %cst_47, %33 : f32
    %130 = arith.addf %128, %129 : f32
    %cst_48 = arith.constant 0.00999999977 : f32
    %131 = arith.mulf %cst_48, %51 : f32
    %132 = arith.addf %130, %131 : f32
    %cst_49 = arith.constant 0.00999999977 : f32
    %133 = arith.mulf %cst_49, %87 : f32
    %134 = arith.addf %132, %133 : f32
    %c0_50 = arith.constant 0 : index
    %c0_51 = arith.constant 0 : index
    %135 = memref.load %arg9[%c0_50, %c0_51] : memref<1x1xf32, #tpu.memory_space<smem>>
    memref.store %134, %arg9[%c0_50, %c0_51] : memref<1x1xf32, #tpu.memory_space<smem>>
    return
  }
}

</mosaic_0001>

<bundles_post_ra>
// kernel: tpu_custom_call.1
= control target key start
LH: loop header
LB: loop body
LE: loop exit
PB: predicated region body
PF: predicated region fallthrough
CT: control target
= control target key end

     0   :  { %v501_v1 = vmov 1   ;;  %s689_s0 = inlined_call_operand.vmem [shape: s32[8,2], index: 0, kind: input, shape index: {}]   ;;  %s690_s1 = inlined_call_operand.vmem [shape: f32[8,4], index: 1, kind: input, shape index: {}]   ;;  %s691_s2 = inlined_call_operand.vmem [shape: f32[8,3], index: 2, kind: input, shape index: {}]   ;;  %s692_s3 = inlined_call_operand.vmem [shape: f32[8,32], index: 3, kind: input, shape index: {}]   ;;  %s693_s4 = inlined_call_operand.vmem [shape: f32[3,32], index: 4, kind: input, shape index: {}]   ;;  %s694_s5 = inlined_call_operand.vmem [shape: f32[4,32], index: 5, kind: input, shape index: {}]   ;;  %s695_s6 = inlined_call_operand.vmem [shape: f32[64,32], index: 6, kind: input, shape index: {}]   ;;  %s696_s7 = inlined_call_operand.vmem [shape: f32[65,4], index: 7, kind: input, shape index: {}]   ;;  %s697_s8 = inlined_call_operand.<no memory space> [shape: f32[1,1], index: 8, kind: input, shape index: {}]   ;;  %s698_s9 = inlined_call_operand.hbm [shape: f32[1,1], index: 9, kind: output, shape index: {}]  }
   0x1   :  { %v37_v0 = vld [vmem:[%s689_s0] sm:$0xff]  ;;  %457 = vset.pattern.permute.xlu0 %v501_v1 }
   0x2   :  { %15 = vsyncpa [#allocation4], 0  ;;  %47 = vperm.xlu0 %457, %v37_v0   ;;  %v502_v2 = vmov 0   ;;  %v127_v3 = vld [vmem:[%s693_s4] sm:$0x7]  ;;  %vm142_vm0 = vcmask 1042432   ;;  %v38_v8 = vlaneseq  ;;  %v312_v54 = vstv %s697_s8 }
   0x3   :  { %434 = vmatpush.msk.msra.mxu0 %vm142_vm0, %v127_v3  ;;  %v128_v4 = vld [vmem:[%s694_s5] sm:$0xf]  ;;  %vm193_vm1 = vcmask 1043456   ;;  %v132_v5 = vld [vmem:[%s695_s6 + $0x18] sm:$0xff]  ;;  %v131_v6 = vld [vmem:[%s695_s6 + $0x10] sm:$0xff]  ;;  %v503_v12 = vmov 0.0  }
   0x4   :  { %437 = vmatpush.msk.msra.mxu2 %vm193_vm1, %v128_v4  ;;  %182 = vmatpush.msra.mxu1 %v132_v5  ;;  %v130_v7 = vld [vmem:[%s695_s6 + $0x8] sm:$0xff]  ;;  %v39_v9 = vand.u32 127, %v38_v8  ;;  %v577_v11 = vld [vmem:[%s691_s2] sm:$0xff]  ;;  %vm90_vm3 = vcmask 23552   ;;  %vm52_vm5 = vcmask 31744   ;;  %v136_v20 = vld [vmem:[%s695_s6 + $0x38] sm:$0xff] }
   0x5   :  { %v587_v16 = vld [vmem:[%s690_s1] sm:$0xff]  ;;  %v135_v21 = vld [vmem:[%s695_s6 + $0x30] sm:$0xff]  ;;  %232 = vmatpush.msra.mxu3 %v136_v20  ;;  %v134_v22 = vld [vmem:[%s695_s6 + $0x28] sm:$0xff]  ;;  %vm166_vm6 = vcmask 261120   ;;  %v91_v47 = vsel %vm90_vm3, %v577_v11, -inf  ;;  %vm70_vm13 = vcmask 7168  }
   0x6   :  { %183 = vmatpush.msra.mxu1 %v131_v6  ;;  %v129_v19 = vld [vmem:[%s695_s6] sm:$0xff]  ;;  %v318_v28 = vld [vmem:[%s696_s7 + $0x18] sm:$0xff]  ;;  %v317_v29 = vld [vmem:[%s696_s7 + $0x10] sm:$0xff]  ;;  %v53_v61 = vsel %vm52_vm5, %v587_v16, -inf  ;;  %s422_s13 = sshll.u32 %s698_s9, 4  ;;  %s505_s16 = smov [#allocation3]   ;;  %s423_s13 = int_to_ptr.hbm [resolvable:$true] %s422_s13 }
   0x7   :  { %233 = vmatpush.msra.mxu3 %v135_v21  ;;  %v133_v23 = vld [vmem:[%s695_s6 + $0x20] sm:$0xff]  ;;  %363 = vmatpush.msrb.mxu2 %v318_v28  ;;  %v316_v30 = vld [vmem:[%s696_s7 + $0x8] sm:$0xff]  ;;  %v322_v31 = vld [vmem:[%s696_s7 + $0x38] sm:$0xff] }
   0x8   :  { %184 = vmatpush.msra.mxu1 %v130_v7  ;;  %v315_v32 = vld [vmem:[%s696_s7] sm:$0xff]  ;;  %v321_v33 = vld [vmem:[%s696_s7 + $0x30] sm:$0xff]  ;;  %340 = vmatpush.msrb.mxu0 %v322_v31  ;;  %v320_v36 = vld [vmem:[%s696_s7 + $0x28] sm:$0xff] }
   0x9   :  { %234 = vmatpush.msra.mxu3 %v134_v22  ;;  %364 = vmatpush.msrb.mxu2 %v317_v29  ;;  %v36_v34 = vld [vmem:[%s692_s3] sm:$0xff] }
   0xa   :  { %458 = vset.pattern.permute.xlu0 %v502_v2  ;;  %185 = vmatpush.msra.mxu1 %v129_v19  ;;  %v319_v37 = vld [vmem:[%s696_s7 + $0x20] sm:$0xff] }
   0xb   :  { %41 = vperm.xlu0 %458, %v37_v0   ;;  %235 = vmatpush.msra.mxu3 %v133_v23  ;;  %v460_v29 = vld [vmem:[%s696_s7 + $0x40] ss:$0 sm:$0xff] }
   0xc   :  { %365 = vmatpush.msrb.mxu2 %v316_v30  ;;  %341 = vmatpush.msrb.mxu0 %v321_v33 }
   0xe   :  { %366 = vmatpush.msrb.mxu2 %v315_v32  ;;  %342 = vmatpush.msrb.mxu0 %v320_v36 }
  0x10   :  { %343 = vmatpush.msrb.mxu0 %v319_v37 }
  0x13   :  { %459 = vset.pattern.permute.xlu0 %v501_v1 }
  0x74   :  { %v48_v10 = vpop.permute.xlu0 %47 }
  0x75   :  { %vm49_vm2 = vcmp.eq.s32.totalorder %v48_v10, %v39_v9 }
  0x76   :  { %v579_v13 = vsel %vm49_vm2, 1.0, %v503_v12 }
  0x77   :  { %v137_v14 = vsub.f32 %v577_v11, %v579_v13 }
  0x79   :  { %435 = vmatmul.msk.f32.vlgmr.msra.gmra.mxu0 %vm90_vm3, %v137_v14 }
  0x7d   :  { %v42_v15 = vpop.permute.xlu0 %41 }
  0x7e   :  { %vm43_vm4 = vcmp.eq.s32.totalorder %v42_v15, %v39_v9 }
  0x7f   :  { %v589_v17 = vsel %vm43_vm4, 1.0, %v503_v12 }
  0x80   :  { %v138_v18 = vsub.f32 %v587_v16, %v589_v17  ;;  %v65_v10 = vmul.f32 %v589_v17, %v587_v16 }
  0x82   :  { %438 = vmatmul.msk.f32.vlgmr.msra.gmra.mxu2 %vm52_vm5, %v138_v18  ;;  %v66_v15 = vsel %vm52_vm5, %v65_v10, 0.0 }
  0x8a   :  { %441 = vmatmul.msk.f32.vlgmr.msrb.gmra.mxu2 %vm166_vm6, %v36_v34 }
  0xf6   :  { %v163_v24 = vpop.f32.mrf.mxu0 }
  0xf7   :  { %436 = vmatmul.msk.f32.vlgmr.msra.gmra.mxu1 %vm166_vm6, %v163_v24  ;;  %v293_v25 = vmul.f32 %v163_v24, %v163_v24 }
  0xf9   :  { %v294_v26 = vsel %vm166_vm6, %v293_v25, 0.0 }
  0xfa   :  { %295 = vadd.xlane.f32.xlu1 %v294_v26 }
 0x105   :  { %v214_v27 = vpop.f32.mrf.mxu2 }
 0x106   :  { %439 = vmatmul.msk.f32.vlgmr.msra.gmra.mxu3 %vm166_vm6, %v214_v27 }
 0x10d   :  { %v368_v27 = vpop.f32.mrf.mxu2 }
 0x16d   :  { %v296_v35 = vpop.xlane.xlu1 %295 }
 0x16e   :  { %461 = vrsqrt.f32 %v296_v35  ;;  %vm304_vm7 = vcmp.eq.f32.partialorder %v296_v35, inf  ;;  %v307_v49 = vand.u32 2147483648, %v296_v35  ;;  %vm306_vm8 = vcmp.eq.f32.partialorder %v296_v35, 0.0 }
 0x174   :  { %v462_v38 = vpop.eup %461  ;;  %v640_v39 = vpop.f32.mrf.mxu1 }
 0x175   :  { %v298_v40 = vmul.f32 %v462_v38, %v296_v35  ;;  %v240_v41 = vmul.f32 %v640_v39, %v640_v39 }
 0x177   :  { %v299_v42 = vmul.f32 %v462_v38, %v298_v40  ;;  %v241_v43 = vsel %vm166_vm6, %v240_v41, 0.0 }
 0x178   :  { %242 = vadd.xlane.f32.xlu1 %v241_v43 }
 0x179   :  { %v300_v44 = vmul.f32 0.5, %v299_v42 }
 0x17b   :  { %v301_v45 = vsub.f32 1.5, %v300_v44 }
 0x17d   :  { %v302_v46 = vmul.f32 %v462_v38, %v301_v45 }
 0x17f   :  { %v303_v48 = vmul.f32 %v302_v46, %v296_v35 }
 0x180   :  { %92 = vmax.xlane.f32.xlu1 %v91_v47 }
 0x181   :  { %v305_v50 = vsel %vm304_vm7, %v296_v35, %v303_v48 }
 0x182   :  { %v308_v51 = vsel %vm306_vm8, %v307_v49, %v305_v50 }
 0x183   :  { %v310_v52 = vadd.f32 1e-08, %v308_v51 }
 0x185   :  { %463 = vrcp.f32 %v310_v52 }
 0x189   :  { %v647_v53 = vpop.f32.mrf.mxu3 }
 0x18a   :  { %v259_v55 = vmul.f32 %v647_v53, %v647_v53 }
 0x18b   :  { %v464_v56 = vpop.eup %463 }
 0x18c   :  { %v313_v57 = vmul.f32 %v464_v56, %v312_v54  ;;  %v260_v58 = vsel %vm166_vm6, %v259_v55, 0.0 }
 0x18d   :  { %261 = vadd.xlane.f32.xlu2 %v260_v58 }
 0x18e   :  { %v314_v59 = vmul.f32 %v313_v57, %v163_v24 }
 0x190   :  { %v324_v60 = vadd.f32 %v314_v59, %v36_v34 }
 0x192   :  { %440 = vmatmul.msk.f32.vlgmr.msrb.gmra.mxu0 %vm166_vm6, %v324_v60 }
 0x195   :  { %54 = vmax.xlane.f32.xlu2 %v53_v61 }
 0x1eb   :  { %v243_v62 = vpop.xlane.xlu1 %242 }
 0x1ec   :  { %465 = vrsqrt.f32 %v243_v62  ;;  %vm251_vm9 = vcmp.eq.f32.partialorder %v243_v62, inf  ;;  %v254_v26 = vand.u32 2147483648, %v243_v62  ;;  %vm253_vm10 = vcmp.eq.f32.partialorder %v243_v62, 0.0 }
 0x1f2   :  { %v466_v63 = vpop.eup %465 }
 0x1f3   :  { %v658_v0 = vpop.xlane.xlu1 %92  ;;  %v245_v1 = vmul.f32 %v466_v63, %v243_v62 }
 0x1f4   :  { %v94_v2 = vsub.f32 %v577_v11, %v658_v0 }
 0x1f5   :  { %v246_v4 = vmul.f32 %v466_v63, %v245_v1 }
 0x1f6   :  { %v95_v3 = vmul.f32 1.442695, %v94_v2 }
 0x1f7   :  { %v247_v5 = vmul.f32 0.5, %v246_v4 }
 0x1f8   :  { %467 = vpow2.f32 %v95_v3 }
 0x1f9   :  { %v248_v8 = vsub.f32 1.5, %v247_v5 }
 0x1fb   :  { %v249_v12 = vmul.f32 %v466_v63, %v248_v8  ;;  %v103_v63 = vmul.f32 %v579_v13, %v577_v11 }
 0x1fd   :  { %v250_v18 = vmul.f32 %v249_v12, %v243_v62  ;;  %v104_v2 = vsel %vm90_vm3, %v103_v63, 0.0 }
 0x1fe   :  { %v468_v6 = vpop.eup %467 }
 0x1ff   :  { %v97_v7 = vsel %vm90_vm3, %v468_v6, 0.0  ;;  %v252_v25 = vsel %vm251_vm9, %v243_v62, %v250_v18  ;;  %v504_v6 = vmov 8.0  }
 0x200   :  { %98 = vadd.xlane.f32.xlu1 %v97_v7  ;;  %v262_v9 = vpop.xlane.xlu2 %261  ;;  %v255_v31 = vsel %vm253_vm10, %v254_v26, %v252_v25 }
 0x201   :  { %469 = vrsqrt.f32 %v262_v9  ;;  %vm270_vm11 = vcmp.eq.f32.partialorder %v262_v9, inf  ;;  %v256_v36 = vadd.f32 1e-08, %v255_v31  ;;  %vm272_vm12 = vcmp.eq.f32.partialorder %v262_v9, 0.0 }
 0x207   :  { %v470_v14 = vpop.eup %469 }
 0x208   :  { %v264_v19 = vmul.f32 %v470_v14, %v262_v9  ;;  %67 = vadd.xlane.f32.xlu1 %v66_v15  ;;  %v55_v20 = vpop.xlane.xlu2 %54 }
 0x209   :  { %v56_v21 = vsub.f32 %v587_v16, %v55_v20  ;;  %v273_v16 = vand.u32 2147483648, %v262_v9 }
 0x20a   :  { %v265_v22 = vmul.f32 %v470_v14, %v264_v19 }
 0x20b   :  { %v57_v23 = vmul.f32 1.442695, %v56_v21 }
 0x20c   :  { %v266_v24 = vmul.f32 0.5, %v265_v22 }
 0x20d   :  { %471 = vpow2.f32 %v57_v23 }
 0x20e   :  { %v267_v28 = vsub.f32 1.5, %v266_v24  ;;  %473 = vrcp.f32 %v256_v36 }
 0x20f   :  { %v345_v30 = vpop.f32.mrf.mxu0 }
 0x210   :  { %v268_v32 = vmul.f32 %v470_v14, %v267_v28  ;;  %v369_v33 = vadd.f32 %v368_v27, %v345_v30 }
 0x212   :  { %v269_v34 = vmul.f32 %v268_v32, %v262_v9  ;;  %v372_v35 = vadd.f32 %v460_v29, %v369_v33 }
 0x213   :  { %v472_v37 = vpop.eup %471 }
 0x214   :  { %v373_v38 = vsel %vm52_vm5, %v372_v35, -inf  ;;  %v59_v40 = vsel %vm52_vm5, %v472_v37, 0.0  ;;  %v271_v41 = vsel %vm270_vm11, %v262_v9, %v269_v34  ;;  %v474_v44 = vpop.eup %473  ;;  %v385_v4 = vmul.f32 %v589_v17, %v372_v35 }
 0x215   :  { %374 = vmax.xlane.f32.xlu2 %v373_v38  ;;  %60 = vadd.xlane.f32.xlu0 %v59_v40  ;;  %v274_v42 = vsel %vm272_vm12, %v273_v16, %v271_v41  ;;  %v258_v46 = vmul.f32 %v474_v44, %v640_v39 }
 0x216   :  { %v275_v43 = vadd.f32 1e-08, %v274_v42  ;;  %v386_v5 = vsel %vm52_vm5, %v385_v4, 0.0 }
 0x218   :  { %475 = vrcp.f32 %v275_v43 }
 0x21e   :  { %v476_v45 = vpop.eup %475 }
 0x21f   :  { %v277_v47 = vmul.f32 %v476_v45, %v647_v53 }
 0x221   :  { %v278_v48 = vmul.f32 %v277_v47, %v258_v46 }
 0x223   :  { %v279_v49 = vsel %vm166_vm6, %v278_v48, 0.0 }
 0x224   :  { %280 = vadd.xlane.f32.xlu1 %v279_v49 }
 0x273   :  { %v99_v50 = vpop.xlane.xlu1 %98 }
 0x27b   :  { %v68_v57 = vpop.xlane.xlu1 %67 }
 0x288   :  { %v61_v51 = vpop.xlane.xlu0 %60  ;;  %v375_v52 = vpop.xlane.xlu2 %374 }
 0x289   :  { %477 = vlog2.f32 %v61_v51  ;;  %v376_v54 = vsub.f32 %v372_v35, %v375_v52 }
 0x28b   :  { %v377_v55 = vmul.f32 1.442695, %v376_v54 }
 0x28d   :  { %479 = vpow2.f32 %v377_v55 }
 0x28e   :  { %481 = vrcp.f32 %v504_v6 }
 0x28f   :  { %v478_v56 = vpop.eup %477  ;;  %483 = vlog2.f32 %v99_v50 }
 0x290   :  { %v63_v58 = vmul.f32 0.6931472, %v478_v56 }
 0x292   :  { %v64_v59 = vadd.f32 %v63_v58, %v55_v20 }
 0x293   :  { %v480_v60 = vpop.eup %479 }
 0x294   :  { %v379_v39 = vsel %vm52_vm5, %v480_v60, 0.0  ;;  %v69_v53 = vsub.f32 %v64_v59, %v68_v57  ;;  %v482_v7 = vpop.eup %481 }
 0x295   :  { %380 = vadd.xlane.f32.xlu2 %v379_v39  ;;  %v82_v8 = vmul.f32 8.0, %v482_v7  ;;  %v484_v9 = vpop.eup %483  ;;  %vm86_vm14 = vweird.f32 %v482_v7 }
 0x296   :  { %v71_v61 = vsel %vm70_vm13, %v69_v53, 0.0  ;;  %v101_v12 = vmul.f32 0.6931472, %v484_v9 }
 0x297   :  { %v281_v62 = vpop.xlane.xlu1 %280  ;;  %72 = vadd.xlane.f32.xlu1 %v71_v61  ;;  %v83_v11 = vsub.f32 1.0, %v82_v8 }
 0x298   :  { %v282_v1 = vmul.f32 %v281_v62, %v281_v62  ;;  %v102_v17 = vadd.f32 %v101_v12, %v658_v0 }
 0x299   :  { %v84_v18 = vmul.f32 %v482_v7, %v83_v11 }
 0x29a   :  { %v283_v3 = vsel %vm70_vm13, %v282_v1, 0.0 }
 0x29b   :  { %v85_v24 = vadd.f32 %v482_v7, %v84_v18 }
 0x29d   :  { %105 = vadd.xlane.f32.xlu2 %v104_v2  ;;  %v87_v29 = vsel %vm86_vm14, %v482_v7, %v85_v24 }
 0x29f   :  { %284 = vadd.xlane.f32.xlu1 %v283_v3 }
 0x2a5   :  { %387 = vadd.xlane.f32.xlu2 %v386_v5 }
 0x308   :  { %v381_v10 = vpop.xlane.xlu2 %380 }
 0x309   :  { %485 = vlog2.f32 %v381_v10 }
 0x30a   :  { %v73_v13 = vpop.xlane.xlu1 %72 }
 0x30b   :  { %v74_v14 = vrot.slane %v73_v13, 4 }
 0x30d   :  { %v75_v15 = vadd.f32 %v74_v14, %v73_v13 }
 0x30f   :  { %v76_v19 = vrot.slane %v75_v15, 2  ;;  %v486_v20 = vpop.eup %485 }
 0x310   :  { %v106_v21 = vpop.xlane.xlu2 %105  ;;  %v383_v25 = vmul.f32 0.6931472, %v486_v20 }
 0x311   :  { %v107_v22 = vsub.f32 %v102_v17, %v106_v21  ;;  %v77_v23 = vadd.f32 %v76_v19, %v75_v15 }
 0x312   :  { %v384_v30 = vadd.f32 %v383_v25, %v375_v52  ;;  %v285_v33 = vpop.xlane.xlu1 %284 }
 0x313   :  { %v108_v26 = vsel %vm70_vm13, %v107_v22, 0.0  ;;  %v78_v27 = vrot.slane %v77_v23, 1  ;;  %v286_v16 = vrot.slane %v285_v33, 4 }
 0x314   :  { %109 = vadd.xlane.f32.xlu2 %v108_v26 }
 0x315   :  { %v79_v28 = vadd.f32 %v78_v27, %v77_v23  ;;  %v287_v34 = vadd.f32 %v286_v16, %v285_v33 }
 0x317   :  { %442 = vpush %v79_v28  ;;  %v288_v35 = vrot.slane %v287_v34, 2 }
 0x318   :  { %444 = vpush %v87_v29  ;;  %v388_v31 = vpop.xlane.xlu2 %387 }
 0x319   :  { %v389_v32 = vsub.f32 %v384_v30, %v388_v31  ;;  %v289_v40 = vadd.f32 %v288_v35, %v287_v34 }
 0x31b   :  { %v390_v0 = vsel %vm70_vm13, %v389_v32, 0.0  ;;  %v290_v44 = vrot.slane %v289_v40, 1 }
 0x31c   :  { %391 = vadd.xlane.f32.xlu2 %v390_v0 }
 0x31d   :  { %v291_v49 = vadd.f32 %v290_v44, %v289_v40 }
 0x348   :  { %s443_s7 = spop %442 }
 0x349   :  { %s445_s24 = spop %444 }
 0x34a   :  { %s89_s1 = smul.f32 %s445_s24, %s443_s7 }
 0x34c   :  { %s409_s28 = smul.f32 0.01, %s89_s1 }
 0x387   :  { %v110_v36 = vpop.xlane.xlu2 %109 }
 0x388   :  { %v111_v37 = vrot.slane %v110_v36, 4 }
 0x38a   :  { %v112_v38 = vadd.f32 %v111_v37, %v110_v36 }
 0x38c   :  { %v113_v41 = vrot.slane %v112_v38, 2 }
 0x38e   :  { %v114_v42 = vadd.f32 %v113_v41, %v112_v38 }
 0x38f   :  { %v392_v43 = vpop.xlane.xlu2 %391 }
 0x390   :  { %v393_v45 = vrot.slane %v392_v43, 4  ;;  %v115_v46 = vrot.slane %v114_v42, 1 }
 0x392   :  { %v394_v47 = vadd.f32 %v393_v45, %v392_v43  ;;  %v116_v48 = vadd.f32 %v115_v46, %v114_v42 }
 0x394   :  { %v395_v50 = vrot.slane %v394_v47, 2  ;;  %446 = vpush %v116_v48 }
 0x395   :  { %448 = vpush %v291_v49 }
 0x396   :  { %v396_v51 = vadd.f32 %v395_v50, %v394_v47 }
 0x398   :  { %v397_v52 = vrot.slane %v396_v51, 1 }
 0x39a   :  { %v398_v54 = vadd.f32 %v397_v52, %v396_v51 }
 0x39c   :  { %450 = vpush %v398_v54 }
 0x3c5   :  { %s447_s25 = spop %446 }
 0x3c6   :  { %s126_s26 = smul.f32 %s447_s25, %s445_s24  ;;  %s449_s27 = spop %448 }
 0x3c7   :  { %s413_s14 = smul.f32 0.01, %s449_s27 }
 0x3c8   :  { %s411_s10 = smul.f32 0.01, %s126_s26 }
 0x3cd   :  { %s451_s29 = spop %450 }
 0x3ce   :  { %s408_s30 = smul.f32 %s451_s29, %s445_s24 }
 0x3d0   :  { %s410_s11 = sadd.f32 %s409_s28, %s408_s30 }
 0x3d2   :  { %s412_s0 = sadd.f32 %s411_s10, %s410_s11 }
 0x3d4   :  { %s414_s15 = sadd.f32 %s413_s14, %s412_s0 }
 0x3d6   :  { %416 = sst [smem:[#allocation3]] %s414_s15 }
 0x3d7   :  { %425 = dma.smem_to_hbm %s505_s16, 16, %s423_s13, [#allocation4]  }
 0x3d8   :  { %499 = dma.done.wait [#allocation4], 16  }
 0x3d9   :  { %500 = vsyncadd [#allocation4], 4294967280 }
 0x3da   :  { %430 = sfence }
 0x3db   :  { %431 = vsyncpa [#allocation4], 1 }

</bundles_post_ra>
